<compile_context>
chip_gen: v7x
topology: tpu7x:2x2x1
jax: 0.10.0
libtpu: 0.0.40
codegen_flags: <defaults>
</compile_context>

<pallas_src>
import functools
import itertools

import numpy as np
import jax
import jax.numpy as jnp
from jax.experimental import pallas as pl
from jax.experimental.pallas import tpu as pltpu

ALPHA = 0.25
GAMMA = 2.0      # == 2 exactly; implemented as explicit squares in the kernel
EPS = 1e-8


def _round_up(x, m):
    return ((x + m - 1) // m) * m


def _cost_matrix_kernel(logits_ref, pbox_ref, onehot_ref, tfeat_ref, out_ref,
                        *, w_class, w_bbox, w_giou, fold_bbox):
    # logits_ref : [TN, C]      flattened prediction logits (input dtype)
    # pbox_ref   : [TN, 2]      predicted segments (center, width), f32
    # onehot_ref : [C, T_pad]   bf16 one-hot of target class ids (zero-padded)
    # tfeat_ref  : [8, T_pad]   f32 rows: tc*wb, tw*wb, t1, t2, area_t, 0, 0, 0
    # out_ref    : [TN, T_pad]  weighted cost matrix (lane-dense)
    logits = logits_ref[...].astype(jnp.float32)                 # [TN, C]
    p = jax.nn.sigmoid(logits)                                   # out_prob
    om = 1.0 - p

    # focal-style classification cost; gamma == 2 -> explicit squares (VPU, no pow)
    neg_cost = (1.0 - ALPHA) * (p * p) * (-jnp.log(om + EPS))
    pos_cost = ALPHA * (om * om) * (-jnp.log(p + EPS))
    diff = pos_cost - neg_cost                                   # [TN, C] f32
    if w_class != 1.0:
        # fold the class weight on the narrow [TN, C] tile (not on [TN, T_pad])
        diff = diff * jnp.float32(w_class)
    # gather over classes at tgt_ids expressed as a bf16 MXU matmul, f32 acc
    cost_class = jnp.dot(diff.astype(jnp.bfloat16), onehot_ref[...],
                         preferred_element_type=jnp.float32)     # [TN, T_pad]

    pb = pbox_ref[...].astype(jnp.float32)                       # [TN, 2]
    pc = pb[:, 0:1]                                              # [TN, 1]
    pw = pb[:, 1:2]                                              # [TN, 1]

    tf = tfeat_ref[...]                                          # [8, T_pad]
    tc_w = tf[0:1, :]          # target center (w_bbox-folded when fold_bbox)
    tw_w = tf[1:2, :]          # target width  (w_bbox-folded when fold_bbox)
    t1 = tf[2:3, :]
    t2 = tf[3:4, :]
    area_t = tf[4:5, :]        # == tw (unscaled)

    # cost_bbox = w_bbox * cdist(out_bbox, tgt_bbox, p=1)
    if fold_bbox:
        # |w*(a-b)| == w*|a-b| for w >= 0; the scale is a per-row [TN,1] mul.
        pc_b = pc if w_bbox == 1.0 else pc * jnp.float32(w_bbox)
        pw_b = pw if w_bbox == 1.0 else pw * jnp.float32(w_bbox)
        cost_bbox = jnp.abs(pc_b - tc_w) + jnp.abs(pw_b - tw_w)  # already * w_bbox
    else:
        cost_bbox = jnp.float32(w_bbox) * (jnp.abs(pc - tc_w) + jnp.abs(pw - tw_w))

    # segment_cw_to_t1t2 + segment_iou  ->  cost_giou = -iou
    hw = 0.5 * pw
    p1 = pc - hw
    p2 = pc + hw
    lt = jnp.maximum(p1, t1)
    rb = jnp.minimum(p2, t2)
    inter = jnp.maximum(rb - lt, 0.0)
    union = (pw + area_t) - inter        # area_p == pw for (center,width) segments
    iou = inter * pl.reciprocal(union, approx=True)              # EUP vrcp
    giou_term = iou if w_giou == 1.0 else jnp.float32(w_giou) * iou

    out_ref[...] = (cost_bbox + cost_class - giou_term).astype(out_ref.dtype)


def _vmem_plan(num_classes, t_pad, in_itemsize):
    """Generation-aware VMEM budget and honest per-row working-set bytes."""
    try:
        vmem_cap = int(pltpu.get_tpu_info().vmem_capacity_bytes)
    except Exception:
        vmem_cap = 64 << 20           # conservative fallback (v7x-sized VMEM)

    if vmem_cap <= (64 << 20):        # v7x-class TensorCore (64 MiB VMEM)
        pick_budget, limit_cap = 16 << 20, 40 << 20
    else:                             # v5e / v6e (128 MiB VMEM)
        pick_budget, limit_cap = 24 << 20, 64 << 20

    # double-buffered streamed tiles: logits, pbox, output
    stream_per_row = 2 * (num_classes * in_itemsize + 2 * 4 + t_pad * 4)
    # kernel-internal temporaries: materialized MXU result (f32 [tile,T_pad]),
    # fused elementwise temps on the lane-dense path, bf16+f32 class-cost temps
    scratch_per_row = 2 * t_pad * 4 + num_classes * (2 + 4)
    per_row = stream_per_row + scratch_per_row

    # grid-invariant inputs (onehot, tfeat) are still allocated double-buffered
    resident = 2 * (num_classes * t_pad * 2 + 8 * t_pad * 4)
    headroom = 8 << 20
    return per_row, resident, headroom, pick_budget, limit_cap, vmem_cap


def _pick_tile_n(per_row, resident, headroom, pick_budget, limit_cap):
    """Largest power-of-two row tile whose full working set fits the budget."""
    avail = min(pick_budget, limit_cap - headroom) - resident
    tile = 1024
    while tile > 8 and tile * per_row > avail:
        tile //= 2
    return tile


def compute_cost_matrix(pred_logits, pred_segments, tgt_ids, tgt_segments,
                        cost_class=1.0, cost_bbox=1.0, cost_giou=1.0):
    """Returns C of shape [bs, num_queries, total_num_targets] (float32)."""
    bs, nq, num_classes = pred_logits.shape
    n = bs * nq
    t = int(tgt_ids.shape[0])
    t_pad = _round_up(max(t, 1), 128)          # lane-dense output / matmul

    w_class = float(cost_class)
    w_bbox = float(cost_bbox)
    w_giou = float(cost_giou)
    fold_bbox = w_bbox >= 0.0                  # |w(a-b)| == w|a-b| only for w >= 0

    # keep the original input dtypes for the big tensor; casts happen in-kernel
    logits2d = pred_logits.reshape(n, num_classes)
    pbox = pred_segments.reshape(n, 2).astype(jnp.float32)
    in_itemsize = jnp.dtype(logits2d.dtype).itemsize

    # ---- VMEM planning (honest accounting, generation aware) ----
    per_row, resident, headroom, pick_budget, limit_cap, vmem_cap = _vmem_plan(
        num_classes, t_pad, in_itemsize)
    tile_budget = _pick_tile_n(per_row, resident, headroom, pick_budget, limit_cap)

    tile_n = min(tile_budget, _round_up(n, 8))
    n_pad = _round_up(n, tile_n)
    # keep >= 2 grid steps when possible so the "parallel" axis can span both
    # TensorCores on v7x (no-op on single-TC v5e/v6e).
    if n_pad // tile_n < 2 and tile_n > 8:
        tile_n = max(8, _round_up((tile_n + 1) // 2, 8))
        n_pad = _round_up(n, tile_n)
    grid_n = n_pad // tile_n

    need = tile_n * per_row + resident + headroom
    vmem_limit = int(min(max(need, 32 << 20), limit_cap))
    vmem_limit = int(min(vmem_limit, vmem_cap - (4 << 20)))       # never exceed HW

    if n_pad != n:
        logits2d = jnp.pad(logits2d, ((0, n_pad - n), (0, 0)))
        pbox = jnp.pad(pbox, ((0, n_pad - n), (0, 0)))

    # one-hot of target class ids, zero-padded columns keep cost_class clean
    onehot = jax.nn.one_hot(tgt_ids, num_classes, dtype=jnp.bfloat16).T  # [C, T]
    onehot = jnp.pad(onehot, ((0, 0), (0, t_pad - t)))                   # [C, T_pad]

    # target-side transforms hoisted out of the kernel (lane-dense rows);
    # padded columns get width 1 so the padded-lane iou stays finite.
    tseg = tgt_segments.astype(jnp.float32)
    tc = jnp.pad(tseg[:, 0], (0, t_pad - t), constant_values=0.0)
    tw = jnp.pad(tseg[:, 1], (0, t_pad - t), constant_values=1.0)
    t1 = tc - 0.5 * tw
    t2 = tc + 0.5 * tw
    area_t = tw                                  # t2 - t1 == tw
    bscale = w_bbox if (fold_bbox and w_bbox != 1.0) else 1.0
    zeros = jnp.zeros_like(tc)
    tfeat = jnp.stack([tc * bscale, tw * bscale, t1, t2, area_t,
                       zeros, zeros, zeros], axis=0)               # [8, T_pad]

    kernel = functools.partial(_cost_matrix_kernel,
                               w_class=w_class, w_bbox=w_bbox,
                               w_giou=w_giou, fold_bbox=fold_bbox)

    c_flat = pl.pallas_call(
        kernel,
        out_shape=jax.ShapeDtypeStruct((n_pad, t_pad), jnp.float32),
        grid=(grid_n,),
        in_specs=[
            pl.BlockSpec((tile_n, num_classes), lambda i: (i, 0)),
            pl.BlockSpec((tile_n, 2), lambda i: (i, 0)),
            pl.BlockSpec((num_classes, t_pad), lambda i: (0, 0)),
            pl.BlockSpec((8, t_pad), lambda i: (0, 0)),
        ],
        out_specs=pl.BlockSpec((tile_n, t_pad), lambda i: (i, 0)),
        compiler_params=pltpu.CompilerParams(
            dimension_semantics=("parallel",),
            vmem_limit_bytes=vmem_limit),
    )(logits2d, pbox, onehot, tfeat)

    # drop padded rows/lanes (padded giou/bbox lanes hold dummy values)
    return c_flat[:n, :t].reshape(bs, nq, t)


def _linear_sum_assignment_small(cost):
    """Exact brute-force assignment for tiny matrices (n_cols <= n_rows)."""
    # TODO(synk): Hungarian algorithm (scipy.linear_sum_assignment) is sequential
    # and data-dependent; no clean Pallas equivalent, solved exactly on host.
    n_rows, n_cols = cost.shape
    assert n_cols <= n_rows, "demo solver expects num_targets <= num_queries"
    best_rows, best_cost = None, np.inf
    cols = list(range(n_cols))
    for rows in itertools.permutations(range(n_rows), n_cols):
        c = cost[list(rows), cols].sum()
        if c < best_cost:
            best_cost, best_rows = c, rows
    row_ind = np.asarray(best_rows, dtype=np.int64)
    col_ind = np.arange(n_cols, dtype=np.int64)
    order = np.argsort(row_ind)
    return row_ind[order], col_ind[order]


def hungarian_matcher_forward(outputs, targets,
                              cost_class=1.0, cost_bbox=1.0, cost_giou=1.0):
    """JAX/Pallas equivalent of HungarianMatcher.forward (layer=None path)."""
    tgt_ids = jnp.concatenate([v["labels"] for v in targets
                               if v["labels"].shape[0]])
    tgt_bbox = jnp.concatenate([v["segments"] for v in targets
                                if v["segments"].shape[0]])
    C = compute_cost_matrix(outputs["pred_logits"], outputs["pred_segments"],
                            tgt_ids, tgt_bbox,
                            cost_class=cost_class, cost_bbox=cost_bbox,
                            cost_giou=cost_giou)
    C_np = np.asarray(jax.block_until_ready(C))
    sizes = [int(v["segments"].shape[0]) for v in targets]
    indices = []
    offset = 0
    for i, s in enumerate(sizes):
        c_i = C_np[i, :, offset:offset + s]
        indices.append(_linear_sum_assignment_small(c_i))
        offset += s
    return C, [(np.asarray(i, np.int64), np.asarray(j, np.int64))
               for i, j in indices]


def _reference_cost_matrix(pred_logits, pred_segments, tgt_ids, tgt_segments,
                           wc=1.0, wb=1.0, wg=1.0):
    """Pure-numpy f32 reference of the cost matrix (mirrors the PyTorch module)."""
    bs, nq, nc = pred_logits.shape
    p = 1.0 / (1.0 + np.exp(-pred_logits.reshape(bs * nq, nc)))
    neg = (1 - ALPHA) * p ** GAMMA * -np.log(1 - p + EPS)
    pos = ALPHA * (1 - p) ** GAMMA * -np.log(p + EPS)
    cost_class = (pos - neg)[:, tgt_ids]
    ob = pred_segments.reshape(bs * nq, 2)
    tb = tgt_segments
    cost_bbox = np.abs(ob[:, None, :] - tb[None, :, :]).sum(-1)
    o1, o2 = ob[:, 0] - ob[:, 1] / 2, ob[:, 0] + ob[:, 1] / 2
    t1, t2 = tb[:, 0] - tb[:, 1] / 2, tb[:, 0] + tb[:, 1] / 2
    lt = np.maximum(o1[:, None], t1[None, :])
    rb = np.minimum(o2[:, None], t2[None, :])
    inter = np.clip(rb - lt, 0, None)
    union = (o2 - o1)[:, None] + (t2 - t1)[None, :] - inter
    giou = -(inter / union)
    C = wb * cost_bbox + wc * cost_class + wg * giou
    return C.reshape(bs, nq, -1)


if __name__ == "__main__":
    key = jax.random.PRNGKey(0)
    bs, num_queries, num_classes = 2, 8, 4
    sizes = [3, 3]  # ground-truth segments per batch element

    k1, k2, k3, k4, k5 = jax.random.split(key, 5)
    pred_logits = jax.random.normal(k1, (bs, num_queries, num_classes),
                                    dtype=jnp.float32)
    centers = jax.random.uniform(k2, (bs, num_queries, 1), minval=0.2,
                                 maxval=0.8)
    widths = jax.random.uniform(k3, (bs, num_queries, 1), minval=0.05,
                                maxval=0.3)
    pred_segments = jnp.concatenate([centers, widths], axis=-1)

    targets = []
    lkeys = jax.random.split(k4, bs)
    skeys = jax.random.split(k5, bs)
    for b in range(bs):
        labels = jax.random.randint(lkeys[b], (sizes[b],), 0, num_classes)
        tc = jax.random.uniform(skeys[b], (sizes[b], 1), minval=0.2,
                                maxval=0.8)
        tw = jax.random.uniform(jax.random.fold_in(skeys[b], 1),
                                (sizes[b], 1), minval=0.05, maxval=0.3)
        targets.append({"labels": labels,
                        "segments": jnp.concatenate([tc, tw], axis=-1)})

    outputs = {"pred_logits": pred_logits, "pred_segments": pred_segments}

    C, indices = hungarian_matcher_forward(outputs, targets)
    C = jax.block_until_ready(C)

    # verify cost-matrix hot path against a numpy f32 reference.
    # tolerance is relaxed vs. pure-f32 because the class-gather matmul uses
    # bf16 MXU operands (~2^-9 rel rounding on `diff`) and the iou uses the
    # approximate EUP reciprocal (both well inside rtol=1e-2).
    tgt_ids_np = np.concatenate([np.asarray(v["labels"]) for v in targets])
    tgt_seg_np = np.concatenate([np.asarray(v["segments"]) for v in targets])
    C_ref = _reference_cost_matrix(np.asarray(pred_logits),
                                   np.asarray(pred_segments),
                                   tgt_ids_np, tgt_seg_np)
    np.testing.assert_allclose(np.asarray(C), C_ref, rtol=1e-2, atol=2e-2)

    for (src, tgt), s in zip(indices, sizes):
        assert len(src) == len(tgt) == min(num_queries, s)

    print("KERNEL_OK")
</pallas_src>

<mosaic_0001>
module attributes {stable_mosaic.version = 11 : i64} {
  func.func @_cost_matrix_kernel(%arg0: i32, %arg1: memref<8x4xf32, #tpu.memory_space<vmem>>, %arg2: memref<8x2xf32, #tpu.memory_space<vmem>>, %arg3: memref<4x128xbf16, #tpu.memory_space<vmem>>, %arg4: memref<8x128xf32, #tpu.memory_space<vmem>>, %arg5: memref<8x128xf32, #tpu.memory_space<vmem>>) attributes {dimension_semantics = [#tpu.dimension_semantics<parallel>], iteration_bounds = array<i64: 2>, scalar_prefetch = 0 : i64, scratch_operands = 0 : i64, tpu.core_type = #tpu.core_type<tc>, window_params = [{transform_indices = @transform_0, window_bounds = array<i64: 8, 4>}, {transform_indices = @transform_1, window_bounds = array<i64: 8, 2>}, {pipeline_mode = #tpu.pipeline_mode<synchronous>, transform_indices = @transform_2, window_bounds = array<i64: 4, 128>}, {pipeline_mode = #tpu.pipeline_mode<synchronous>, transform_indices = @transform_3, window_bounds = array<i64: 8, 128>}, {transform_indices = @transform_4, window_bounds = array<i64: 8, 128>}]} {
    %c0 = arith.constant 0 : index
    %c0_0 = arith.constant 0 : index
    %0 = vector.load %arg1[%c0, %c0_0] : memref<8x4xf32, #tpu.memory_space<vmem>>, vector<8x4xf32>
    %1 = arith.negf %0 : vector<8x4xf32>
    %2 = math.exp %1 : vector<8x4xf32>
    %cst = arith.constant 1.000000e+00 : f32
    %3 = vector.broadcast %cst : f32 to vector<8x4xf32>
    %4 = arith.addf %3, %2 : vector<8x4xf32>
    %5 = arith.divf %3, %4 : vector<8x4xf32>
    %cst_1 = arith.constant 1.000000e+00 : f32
    %6 = vector.broadcast %cst_1 : f32 to vector<8x4xf32>
    %7 = arith.subf %6, %5 : vector<8x4xf32>
    %8 = arith.mulf %5, %5 : vector<8x4xf32>
    %cst_2 = arith.constant 7.500000e-01 : f32
    %9 = vector.broadcast %cst_2 : f32 to vector<8x4xf32>
    %10 = arith.mulf %9, %8 : vector<8x4xf32>
    %cst_3 = arith.constant 9.99999993E-9 : f32
    %11 = vector.broadcast %cst_3 : f32 to vector<8x4xf32>
    %12 = arith.addf %7, %11 : vector<8x4xf32>
    %13 = math.log %12 : vector<8x4xf32>
    %cst_4 = arith.constant 0.000000e+00 : f32
    %14 = vector.broadcast %cst_4 : f32 to vector<8x4xf32>
    %15 = arith.subf %14, %13 : vector<8x4xf32>
    %16 = arith.mulf %10, %15 : vector<8x4xf32>
    %17 = arith.mulf %7, %7 : vector<8x4xf32>
    %cst_5 = arith.constant 2.500000e-01 : f32
    %18 = vector.broadcast %cst_5 : f32 to vector<8x4xf32>
    %19 = arith.mulf %18, %17 : vector<8x4xf32>
    %cst_6 = arith.constant 9.99999993E-9 : f32
    %20 = vector.broadcast %cst_6 : f32 to vector<8x4xf32>
    %21 = arith.addf %5, %20 : vector<8x4xf32>
    %22 = math.log %21 : vector<8x4xf32>
    %cst_7 = arith.constant 0.000000e+00 : f32
    %23 = vector.broadcast %cst_7 : f32 to vector<8x4xf32>
    %24 = arith.subf %23, %22 : vector<8x4xf32>
    %25 = arith.mulf %19, %24 : vector<8x4xf32>
    %26 = arith.subf %25, %16 : vector<8x4xf32>
    %27 = arith.truncf %26 : vector<8x4xf32> to vector<8x4xbf16>
    %c0_8 = arith.constant 0 : index
    %c0_9 = arith.constant 0 : index
    %28 = vector.load %arg3[%c0_8, %c0_9] : memref<4x128xbf16, #tpu.memory_space<vmem>>, vector<4x128xbf16>
    %cst_10 = arith.constant dense<0.000000e+00> : vector<8x128xf32>
    %29 = tpu.matmul %27, %28, %cst_10 {dimension_numbers = #tpu.dot_dimension_numbers<[1], [0], [0], [1], [0, 0, 1, 1], [], []>} : vector<8x4xbf16>, vector<4x128xbf16>, vector<8x128xf32> -> vector<8x128xf32>
    %c0_11 = arith.constant 0 : index
    %c0_12 = arith.constant 0 : index
    %30 = vector.load %arg2[%c0_11, %c0_12] : memref<8x2xf32, #tpu.memory_space<vmem>>, vector<8x2xf32>
    %31 = vector.extract_strided_slice %30 {offsets = [0, 0], sizes = [8, 1], strides = [1, 1]} : vector<8x2xf32> to vector<8x1xf32>
    %32 = vector.extract_strided_slice %30 {offsets = [0, 1], sizes = [8, 1], strides = [1, 1]} : vector<8x2xf32> to vector<8x1xf32>
    %c0_13 = arith.constant 0 : index
    %c0_14 = arith.constant 0 : index
    %33 = vector.load %arg4[%c0_13, %c0_14] : memref<8x128xf32, #tpu.memory_space<vmem>>, vector<8x128xf32>
    %34 = vector.extract_strided_slice %33 {offsets = [0, 0], sizes = [1, 128], strides = [1, 1]} : vector<8x128xf32> to vector<1x128xf32>
    %35 = vector.extract_strided_slice %33 {offsets = [1, 0], sizes = [1, 128], strides = [1, 1]} : vector<8x128xf32> to vector<1x128xf32>
    %36 = vector.extract_strided_slice %33 {offsets = [2, 0], sizes = [1, 128], strides = [1, 1]} : vector<8x128xf32> to vector<1x128xf32>
    %37 = vector.extract_strided_slice %33 {offsets = [3, 0], sizes = [1, 128], strides = [1, 1]} : vector<8x128xf32> to vector<1x128xf32>
    %38 = vector.extract_strided_slice %33 {offsets = [4, 0], sizes = [1, 128], strides = [1, 1]} : vector<8x128xf32> to vector<1x128xf32>
    %39 = vector.broadcast %31 : vector<8x1xf32> to vector<8x128xf32>
    %40 = vector.broadcast %34 : vector<1x128xf32> to vector<8x128xf32>
    %41 = arith.subf %39, %40 : vector<8x128xf32>
    %42 = math.absf %41 : vector<8x128xf32>
    %43 = vector.broadcast %32 : vector<8x1xf32> to vector<8x128xf32>
    %44 = vector.broadcast %35 : vector<1x128xf32> to vector<8x128xf32>
    %45 = arith.subf %43, %44 : vector<8x128xf32>
    %46 = math.absf %45 : vector<8x128xf32>
    %47 = arith.addf %42, %46 : vector<8x128xf32>
    %cst_15 = arith.constant 5.000000e-01 : f32
    %48 = vector.broadcast %cst_15 : f32 to vector<8x1xf32>
    %49 = arith.mulf %48, %32 : vector<8x1xf32>
    %50 = arith.subf %31, %49 : vector<8x1xf32>
    %51 = arith.addf %31, %49 : vector<8x1xf32>
    %52 = vector.broadcast %50 : vector<8x1xf32> to vector<8x128xf32>
    %53 = vector.broadcast %36 : vector<1x128xf32> to vector<8x128xf32>
    %54 = arith.maximumf %52, %53 : vector<8x128xf32>
    %55 = vector.broadcast %51 : vector<8x1xf32> to vector<8x128xf32>
    %56 = vector.broadcast %37 : vector<1x128xf32> to vector<8x128xf32>
    %57 = arith.minimumf %55, %56 : vector<8x128xf32>
    %58 = arith.subf %57, %54 : vector<8x128xf32>
    %cst_16 = arith.constant 0.000000e+00 : f32
    %59 = vector.broadcast %cst_16 : f32 to vector<8x128xf32>
    %60 = arith.maximumf %58, %59 : vector<8x128xf32>
    %61 = vector.broadcast %32 : vector<8x1xf32> to vector<8x128xf32>
    %62 = vector.broadcast %38 : vector<1x128xf32> to vector<8x128xf32>
    %63 = arith.addf %61, %62 : vector<8x128xf32>
    %64 = arith.subf %63, %60 : vector<8x128xf32>
    %65 = tpu.reciprocal %64 {approx = true} : vector<8x128xf32> -> vector<8x128xf32>
    %66 = arith.mulf %60, %65 : vector<8x128xf32>
    %67 = arith.addf %47, %29 : vector<8x128xf32>
    %68 = arith.subf %67, %66 : vector<8x128xf32>
    %c0_17 = arith.constant 0 : index
    %c0_18 = arith.constant 0 : index
    %69 = vector.load %arg5[%c0_17, %c0_18] : memref<8x128xf32, #tpu.memory_space<vmem>>, vector<8x128xf32>
    tpu.vector_store %arg5[%c0_17, %c0_18], %68 {strides = array<i32>} : memref<8x128xf32, #tpu.memory_space<vmem>>, vector<8x128xf32>,
    return
  }
  func.func @transform_0(%arg0: i32) -> (i32, i32) {
    %c0_i32 = arith.constant 0 : i32
    %c0_i32_0 = arith.constant 0 : i32
    return %arg0, %c0_i32 : i32, i32
  }
  func.func @transform_1(%arg0: i32) -> (i32, i32) {
    %c0_i32 = arith.constant 0 : i32
    %c0_i32_0 = arith.constant 0 : i32
    return %arg0, %c0_i32 : i32, i32
  }
  func.func @transform_2(%arg0: i32) -> (i32, i32) {
    %c0_i32 = arith.constant 0 : i32
    %c0_i32_0 = arith.constant 0 : i32
    %c0_i32_1 = arith.constant 0 : i32
    return %c0_i32, %c0_i32_0 : i32, i32
  }
  func.func @transform_3(%arg0: i32) -> (i32, i32) {
    %c0_i32 = arith.constant 0 : i32
    %c0_i32_0 = arith.constant 0 : i32
    %c0_i32_1 = arith.constant 0 : i32
    return %c0_i32, %c0_i32_0 : i32, i32
  }
  func.func @transform_4(%arg0: i32) -> (i32, i32) {
    %c0_i32 = arith.constant 0 : i32
    %c0_i32_0 = arith.constant 0 : i32
    return %arg0, %c0_i32 : i32, i32
  }
}

</mosaic_0001>

<bundles_post_ra>
// kernel: tpu_custom_call.1
= control target key start
LH: loop header
LB: loop body
LE: loop exit
PB: predicated region body
PF: predicated region fallthrough
CT: control target
= control target key end

     0   :  { %9 = vsyncpa [#allocation3], 0  ;;  %s716_s0 = inlined_call_operand.vmem [shape: f32[16,4], index: 0, kind: input, shape index: {}]   ;;  %s717_s1 = inlined_call_operand.vmem [shape: f32[16,2], index: 1, kind: input, shape index: {}]   ;;  %s718_s2 = inlined_call_operand.vmem [shape: bf16[4,128], index: 2, kind: input, shape index: {}]   ;;  %s719_s3 = inlined_call_operand.vmem [shape: f32[8,128], index: 3, kind: input, shape index: {}]   ;;  %s720_s4 = inlined_call_operand.hbm [shape: f32[16,128], index: 4, kind: output, shape index: {}]  }
   0x1   :  { %11 = vsyncpa [#allocation3 + $0x1], 0  ;;  %s607_s15 = smov 0   ;;  %s609_s16 = smov 0  }
   0x2   :  { %s611_s17 = smov 0   ;;  %s613_s18 = smov 0  }
   0x3 LB: > { %s628_s19 = sadd.s32 4294967295, %s574_s18   ;;  %s433_s20 = sadd.s32 4294967294, %s574_s18   ;;  %s574_s18 = sphi %s613_s18, %s726_s18   ;;  %s570_s17 = sphi %s611_s17, %s725_s17   ;;  %s566_s16 = sphi %s609_s16, %s724_s16   ;;  %s562_s15 = sphi %s607_s15, %s723_s15  }
   0x4   : > { %s632_s21 = sadd.s32 1, %s574_s18   ;;  %s118_s22 = sadd.s32 1, %s570_s17 }
   0x5   : > { %s115_s23 = ssub.s32 %s574_s18, %s632_s21  ;;  %p128_p0 = scmp.ne.s32.totalorder %s570_s17, %s566_s16 }
   0x6   : > { %p116_p1 = scmp.eq.s32.totalorder %s115_s23, 0  ;;  %p129_p2 = scmp.eq.s32.totalorder %s628_s19, 1 }
   0x7   : > { %p134_p3 = scmp.ne.s32.totalorder %s566_s16, %s562_s15  ;;  %p135_p4 = scmp.eq.s32.totalorder %s433_s20, 1 }
   0x8   : > { %s643_s24 = scalar_select %p116_p1, %s570_s17, %s118_s22  }
   0x9   : > { %p645_p5 = por %p129_p2, %p128_p0  ;;  %p649_p6 = por %p135_p4, %p134_p3 }
   0xa   : > { %p436_p7 = scmp.ge.s32.totalorder %s574_s18, 1  ;;  %p173_p8 = scmp.lt.s32.totalorder %s574_s18, 3 }
   0xc   : > { %p174_p9 = pnand %p436_p7, %p173_p8 }
   0xd   : > { %p202_p10 = scmp.lt.s32.totalorder (!%p174_p9), %s628_s19, 1  ;;  %v235_v0 = vld [vmem:[%s718_s2] sm:$0x3] (!%p174_p9)  ;;  %vm240_vm0 = vcmask (!%p174_p9), 1041408   ;;  %v576_v1 = vmov (!%p174_p9), 0.0   ;;  %vm577_vm1 = vmmov (!%p174_p9), 0   ;;  %v291_v32 = vlaneseq (!%p174_p9) }
   0xe   : > { %177 = sbr.rel (%p174_p9) target bundleno = 311 (0x137), region = 36  ;;  %448 = vmatprep.subr.bf16.mxu0 (!%p174_p9), %v576_v1  ;;  %v242_v2 = vsel (!%p174_p9), %vm240_vm0, %v235_v0, 0  ;;  %450 = vmatprep.mubr.msk.bf16.mxu0 (!%p174_p9), %vm577_vm1, %v576_v1  ;;  %v578_v3 = vmov (!%p174_p9), 0   ;;  %s579_s11 = smov (!%p174_p9), 127   ;;  %vm236_vm2 = vcmask (!%p174_p9), 31744   ;;  %v580_v31 = vmov (!%p174_p9), 1  }
   0xf   : > { %449 = vmatpush3.bf16.msra.mxu0 (!%p174_p9), %v242_v2  ;;  %499 = vset.pattern.permute.xlu1 (!%p174_p9), %v578_v3  ;;  %v292_v33 = vshrl.u32 (!%p174_p9), %v291_v32, 7  ;;  %v285_v36 = vld [vmem:[%s719_s3] sm:$0xff] (!%p174_p9)  ;;  %s199_s14 = sand.u32 (!%p174_p9), 1, %s566_s16   ;;  %s443_s22 = sshll.u32 (!%p174_p9), %s628_s19, 7 }
  0x10   : > { %498 = vset.pattern.permute.xlu0 (!%p174_p9), %v578_v3  ;;  %s437_s20 = sshll.u32 (!%p174_p9), %s199_s14, 3  ;;  %s349_s5 = scalar_lea.sflag (!%p174_p9), [#allocation3], %s199_s14 }
  0x11   : > { %v332_v34 = vsub.s32 (!%p174_p9), 3, %v292_v33  ;;  %v322_v35 = vsub.s32 (!%p174_p9), 2, %v292_v33  ;;  %v339_v39 = vsub.s32 (!%p174_p9), 4, %v292_v33  ;;  %v303_v46 = vsub.s32 (!%p174_p9), 1, %v292_v33  ;;  %s201_s23 = scalar_lea.vmem (!%p174_p9), [#allocation2], %s437_s20 }
  0x12   : > { %v293_v47 = vsub.s32 (!%p174_p9), 0, %v292_v33  ;;  %s362_s27 = sshll.u32 (!%p174_p9), %s201_s23, 4  ;;  %s676_s27 = int_to_ptr.vmem [resolvable:$true] %s362_s27 }
  0x13   : > { %v333_v37 = vrot.slane (!%p174_p9), %v285_v36, %v332_v34  ;;  %v323_v38 = vrot.slane (!%p174_p9), %v285_v36, %v322_v35  ;;  %v340_v44 = vrot.slane (!%p174_p9), %v285_v36, %v339_v39  ;;  %v304_v51 = vrot.slane (!%p174_p9), %v285_v36, %v303_v46  ;;  %s512_s6 = scalar_lea.vmem (!%p174_p9), %s676_s27, 128 }
  0x14   : > { %v294_v52 = vrot.slane (!%p174_p9), %v285_v36, %v293_v47  ;;  %p513_p11 = scmp.ne.s32.totalorder (!%p174_p9), %s676_s27, %s512_s6 }
  0x15   : > { %s203_s29 = scalar_select %p202_p10, %s628_s19, 1 }
  0x16   : > { %p514_p12 = pnand %p513_p11, %p645_p5  ;;  %s581_s19 = smov [#allocation2]  }
  0x17   : > { %s438_s30 = sshll.u32 %s203_s29, 3 }
  0x18   : > { %s209_s7 = scalar_lea.vmem %s717_s1, %s438_s30  ;;  %s205_s10 = scalar_lea.vmem %s716_s0, %s438_s30 }
  0x19   : > { %v284_v4 = vld [vmem:[%s209_s7] sm:$0xff]  ;;  %s674_s30 = scalar_lea.hbm %s720_s4, %s443_s22  ;;  %p515_p13 = pneg %p514_p12 }
  0x1a   : > { %v211_v5 = vld [vmem:[%s205_s10] sm:$0xff]  ;;  %v308_v6 = vmul.f32 0.5, %v284_v4  ;;  %s516_s7 = sshll.u32 %s581_s19, 4  ;;  %s517_s7 = int_to_ptr.vmem [resolvable:$false] %s516_s7 }
  0x1b   : > { %v440_v7 = vmul.f32 -1.442695, %v211_v5  ;;  %s518_s8 = scalar_lea.vmem %s517_s7, 256  ;;  %p519_p0 = scmp.lt.s32.totalorder %s676_s27, %s517_s7 }
  0x1c   : > { %310 = vrot.lane.b32.xlu0 %v308_v6, %s579_s11  ;;  %p520_p1 = scmp.lt.s32.totalorder %s518_s8, %s512_s6 }
  0x1d   : > { %502 = vpow2.f32 %v440_v7 }
  0x1e   : > { %p521_p2 = por %p520_p1, %p519_p0 }
  0x20   : > { %p522_p3 = pnand %p521_p2, %p515_p13 }
  0x27   : > { %v503_v8 = vpop.eup %502 }
  0x28   : > { %v215_v9 = vadd.f32 1.0, %v503_v8 }
  0x2a   : > { %504 = vrcp.f32 %v215_v9 }
  0x34   : > { %v505_v10 = vpop.eup %504 }
  0x35   : > { %v218_v11 = vsub.f32 1.0, %v505_v10  ;;  %v228_v12 = vadd.f32 1e-08, %v505_v10  ;;  %v219_v15 = vmul.f32 %v505_v10, %v505_v10 }
  0x37   : > { %v221_v13 = vadd.f32 1e-08, %v218_v11  ;;  %506 = vlog2.f32 %v228_v12  ;;  %v226_v14 = vmul.f32 %v218_v11, %v218_v11  ;;  %v220_v20 = vmul.f32 0.75, %v219_v15 }
  0x39   : > { %508 = vlog2.f32 %v221_v13  ;;  %v227_v17 = vmul.f32 0.25, %v226_v14 }
  0x41   : > { %v507_v16 = vpop.eup %506 }
  0x42   : > { %v230_v18 = vmul.f32 0.6931472, %v507_v16 }
  0x43   : > { %v509_v19 = vpop.eup %508 }
  0x44   : > { %v223_v21 = vmul.f32 0.6931472, %v509_v19  ;;  %v231_v22 = vsub.f32 0.0, %v230_v18 }
  0x46   : > { %v224_v23 = vsub.f32 0.0, %v223_v21  ;;  %v232_v24 = vmul.f32 %v231_v22, %v227_v17 }
  0x48   : > { %v225_v25 = vmul.f32 %v224_v23, %v220_v20 }
  0x4a   : > { %v233_v26 = vsub.f32 %v232_v24, %v225_v25 }
  0x4c   : > { %v234_v27 = vpack.c.bf16 %v233_v26, %v233_v26 }
  0x4e   : > { %451 = vmatmul.mubr.msk.bf16.vlgmr.msra.gmra.mrb[0].mxu0 %vm236_vm2, %v234_v27 }
  0x8e   : > { %v311_v28 = vpop.permute.xlu0 %310 }
  0x8f   : > { %v313_v29 = vsub.f32 %v284_v4, %v311_v28  ;;  %v314_v30 = vadd.f32 %v311_v28, %v284_v4 }
  0x91   : > { %327 = vperm.xlu1 %499, %v314_v30   ;;  %317 = vperm.xlu0 %498, %v313_v29  }
  0x95   : > { %500 = vset.pattern.permute.xlu1 %v580_v31 }
  0x96   : > { %298 = vperm.xlu1 %500, %v284_v4  }
  0x9a   : > { %501 = vset.pattern.permute.xlu1 %v578_v3 }
  0x9b   : > { %288 = vperm.xlu1 %501, %v284_v4  }
 0x110   : > { %v328_v40 = vpop.permute.xlu1 %327  ;;  %v318_v41 = vpop.permute.xlu0 %317 }
 0x111   : > { %v334_v42 = vmin.f32 %v328_v40, %v333_v37  ;;  %v324_v43 = vmax.f32 %v318_v41, %v323_v38 }
 0x113   : > { %v335_v45 = vsub.f32 %v334_v42, %v324_v43 }
 0x115   : > { %v336_v48 = vmax.f32 %v335_v45, 0.0  ;;  %v299_v49 = vpop.permute.xlu1 %298 }
 0x116   : > { %v341_v50 = vadd.f32 %v340_v44, %v299_v49  ;;  %v305_v55 = vsub.f32 %v299_v49, %v304_v51 }
 0x118   : > { %v342_v53 = vsub.f32 %v341_v50, %v336_v48  ;;  %v306_v58 = vand.u32 2147483647, %v305_v55 }
 0x11a   : > { %510 = vrcp.f32 %v342_v53  ;;  %v289_v54 = vpop.permute.xlu1 %288 }
 0x11b   : > { %v295_v56 = vsub.f32 %v289_v54, %v294_v52 }
 0x11d   : > { %v296_v57 = vand.u32 2147483647, %v295_v56 }
 0x11f   : > { %v307_v60 = vadd.f32 %v306_v58, %v296_v57 }
 0x121   : > { %v278_v59 = vpop.f32.mrb[0].mxu0 }
 0x122   : > { %v452_v61 = vpop.f32.mrb[1].mxu0  ;;  %v345_v2 = vadd.f32 %v307_v60, %v278_v59 }
 0x123   : > { %v281_v62 = vpop.f32.mrb[2].mxu0 }
 0x124   : > { %v453_v63 = vpop.f32.mrb[3].mxu0  ;;  %v511_v0 = vpop.eup %510 }
 0x125   : > { %v344_v1 = vmul.f32 %v511_v0, %v336_v48 }
 0x127   : > { %v346_v3 = vsub.f32 %v345_v2, %v344_v1 }
 0x129   : > { %347 = vst [vmem:[%s201_s23] sm:$0xff] %v346_v3 }
 0x12a   : > { %525 = shalt.err (!%p522_p3)
}
 0x12b   : > { %s526_s9 = scalar_lea.hbm %s674_s30, 128  ;;  %s530_s12 = scalar_lea.hbm %s720_s4, 256 }
 0x12c   : > { %p527_p4 = scmp.ne.s32.totalorder %s674_s30, %s526_s9  ;;  %p531_p9 = scmp.lt.u32.totalorder %s674_s30, %s720_s4 }
 0x12d   : > { %p532_p10 = scmp.lt.u32.totalorder %s530_s12, %s526_s9  ;;  %p534_p12 = scmp.lt.u32.totalorder %s526_s9, %s674_s30 }
 0x12e   : > { %p528_p7 = pnand %p527_p4, %p645_p5 }
 0x12f   : > { %p533_p11 = por %p532_p10, %p531_p9 }
 0x130   : > { %p529_p8 = pneg %p528_p7 }
 0x131   : > { %p535_p13 = por %p534_p12, %p533_p11 }
 0x133   : > { %p536_p0 = pnand %p535_p13, %p529_p8 }
 0x135   : > { %539 = shalt.err (!%p536_p0)
}
 0x136   : > { %454 = dma.vmem_to_hbm [thread:$0]  (%p645_p5), %s676_s27, 128, %s674_s30, %s349_s5  }
 0x137 PF: > { %p460_p1 = scmp.ge.s32.totalorder %s574_s18, 2  ;;  %s374_s20 = sand.u32 1, %s562_s15  }
 0x138   : > { %s375_s22 = scalar_lea.sflag [#allocation3], %s374_s20 }
 0x139   : > { %p457_p2 = pnand %p460_p1, %p649_p6 }
 0x13b   : > { %557 = dma.done.wait (!%p457_p2), %s375_s22, 128  }
 0x13c   : > { %559 = vsyncadd (!%p457_p2), %s375_s22, 4294967168  ;;  %p14_p3 = scmp.ge.s32.totalorder %s632_s21, 4   ;;  %s723_s15 = smov %s566_s16 }
 0x13d   : > { %s724_s16 = smov %s570_s17  ;;  %s725_s17 = smov %s643_s24 }
 0x13e   : > { %s726_s18 = smov %s632_s21  ;;  %16 = sbr.rel (!%p14_p3) target bundleno = 3 (0x3), region = 74 }
 0x145   :  { %380 = vsyncpa [#allocation3], 1 }
 0x146   :  { %382 = vsyncpa [#allocation3 + $0x1], 1 }

</bundles_post_ra>
